<compile_context>
chip_gen: v7x
topology: tpu7x:2x2x1
jax: 0.10.0
libtpu: 0.0.40
codegen_flags: <defaults>
</compile_context>

<pallas_src>
import jax
import jax.numpy as jnp
from jax.experimental import pallas as pl
from jax.experimental.pallas import tpu as pltpu

BN_EPS = 1e-5
_MAX_TM = 16384


# ----------------------------------------------------------------------------
# Tiling / VMEM helpers
# ----------------------------------------------------------------------------
def _vmem_budgets():
    """(tile budget, scoped vmem limit) derived from this chip's VMEM size."""
    phys = 64 * 1024 * 1024                      # conservative default (v7x)
    try:
        phys = int(pltpu.get_tpu_info().vmem_capacity_bytes)
    except Exception:                            # older jax / no TPU info query
        pass
    limit = (phys * 3) // 4                      # ~96 MiB on v5e/v6e, 48 MiB on v7x
    budget = phys // 2                           # what the tiling itself may consume
    return budget, limit


def _pick_m_tile(N, M, Cin, Cout, itemsize, vmem_budget):
    """Lane (flattened-spatial) tile size TM for the (N, M-tiles) grid."""
    if M <= 128:
        return M                                 # single full-extent block
    # Per output-lane VMEM cost: double-buffered x/out blocks + f32 temporaries.
    per_m = 2 * Cin * itemsize + 2 * Cout * itemsize + 8 * Cout
    # Grid-invariant operands (weight, scale, bias; double-buffered) + slack.
    fixed = 2 * Cout * Cin * itemsize + 16 * Cout + (1 << 20)
    tm = (vmem_budget - fixed) // per_m
    # Keep >=4 total grid steps when possible so both v7x TensorCores get >=2
    # pipelined iterations (smaller chips still get DMA/compute overlap).
    min_m_tiles = -(-4 // max(N, 1))
    if min_m_tiles > 1 and M >= 128 * min_m_tiles:
        tm = min(tm, -(-M // min_m_tiles))
    tm = min(tm, (M // 128) * 128, _MAX_TM)
    tm = max(128, (tm // 128) * 128)             # 128-multiple -> lane-dense stores
    return int(tm)


# ----------------------------------------------------------------------------
# Pallas kernel: 1x1 conv (channel matmul) + folded BatchNorm affine
# ----------------------------------------------------------------------------
def _conv_bn_kernel(x_ref, w_ref, scale_ref, bias_ref, o_ref):
    # x_ref:     (Cin, TM)   channels on sublanes, flattened spatial on lanes
    # w_ref:     (Cout, Cin) 1x1 conv weight (network dtype -> native MXU operand)
    # scale/bias (Cout, 1)   f32 folded BatchNorm affine (lane-broadcast)
    # o_ref:     (Cout, TM)  lane-dense output block
    y = jnp.dot(w_ref[...], x_ref[...], preferred_element_type=jnp.float32)
    y = y * scale_ref[...] + bias_ref[...]
    o_ref[...] = y.astype(o_ref.dtype)


def _conv1x1_bn(xm, weight, scale, bias):
    """xm: (N, Cin, M) -> (N, Cout, M)."""
    N, Cin, M = xm.shape
    Cout = weight.shape[0]
    itemsize = jnp.dtype(xm.dtype).itemsize
    budget, limit = _vmem_budgets()
    TM = _pick_m_tile(N, M, Cin, Cout, itemsize, budget)
    grid = (N, pl.cdiv(M, TM))

    return pl.pallas_call(
        _conv_bn_kernel,
        out_shape=jax.ShapeDtypeStruct((N, Cout, M), xm.dtype),
        grid_spec=pltpu.PrefetchScalarGridSpec(
            num_scalar_prefetch=0,
            grid=grid,
            in_specs=[
                pl.BlockSpec((None, Cin, TM), lambda n, i: (n, 0, i)),
                pl.BlockSpec((Cout, Cin), lambda n, i: (0, 0)),   # grid-invariant
                pl.BlockSpec((Cout, 1), lambda n, i: (0, 0)),     # grid-invariant
                pl.BlockSpec((Cout, 1), lambda n, i: (0, 0)),     # grid-invariant
            ],
            out_specs=pl.BlockSpec((None, Cout, TM), lambda n, i: (n, 0, i)),
        ),
        compiler_params=pltpu.CompilerParams(
            dimension_semantics=("parallel", "parallel"),
            vmem_limit_bytes=limit,
        ),
    )(xm, weight, scale, bias)


# ----------------------------------------------------------------------------
# Wrapper-side reductions (each is exactly one fused XLA pass over x)
# ----------------------------------------------------------------------------
def _avg_pool_ceil(x, sh, sw):
    """nn.AvgPool2d(kernel_size=(sh, sw), stride=(sh, sw), padding=0, ceil_mode=True)."""
    if sh == 1 and sw == 1:
        return x
    N, C, H, W = x.shape
    Ho, Wo = -(-H // sh), -(-W // sw)
    pad_h, pad_w = Ho * sh - H, Wo * sw - W
    if pad_h == 0 and pad_w == 0:
        # Free view + one fused reduction pass.
        return x.reshape(N, C, Ho, sh, Wo, sw).mean(axis=(3, 5))
    # ceil_mode: clipped edge windows are divided by their true element count.
    sums = jax.lax.reduce_window(
        x, jnp.zeros((), x.dtype), jax.lax.add,
        window_dimensions=(1, 1, sh, sw), window_strides=(1, 1, sh, sw),
        padding=((0, 0), (0, 0), (0, pad_h), (0, pad_w)))
    counts = jax.lax.reduce_window(
        jnp.ones((H, W), jnp.float32), jnp.zeros((), jnp.float32), jax.lax.add,
        window_dimensions=(sh, sw), window_strides=(sh, sw),
        padding=((0, pad_h), (0, pad_w)))
    return (sums.astype(jnp.float32) / counts).astype(x.dtype)


# ----------------------------------------------------------------------------
# Parameter construction (deterministic, synthetic) + BN folding (eval mode)
# ----------------------------------------------------------------------------
def make_params(in_channels, out_channels, key):
    k_w, k_g, k_b, k_m, k_v = jax.random.split(key, 5)
    # nn.Conv2d weight (Cout, Cin, 1, 1) -> stored as (Cout, Cin)
    w = 0.1 * jax.random.normal(k_w, (out_channels, in_channels), jnp.float32)
    gamma = 1.0 + 0.1 * jax.random.normal(k_g, (out_channels,), jnp.float32)
    beta = 0.1 * jax.random.normal(k_b, (out_channels,), jnp.float32)
    running_mean = 0.1 * jax.random.normal(k_m, (out_channels,), jnp.float32)
    running_var = jnp.abs(jax.random.normal(k_v, (out_channels,), jnp.float32)) + 0.5
    return dict(weight=w, gamma=gamma, beta=beta,
                running_mean=running_mean, running_var=running_var)


def fold_bn(params):
    scale = params["gamma"] * jax.lax.rsqrt(params["running_var"] + BN_EPS)
    bias = params["beta"] - params["running_mean"] * scale
    return (scale.reshape(-1, 1).astype(jnp.float32),
            bias.reshape(-1, 1).astype(jnp.float32))


# ----------------------------------------------------------------------------
# ShortCut forward (NCHW in / NCHW out), dispatching on the module config
# ----------------------------------------------------------------------------
def shortcut_forward(x_nchw, in_channels, out_channels, stride, if_first, params):
    sh, sw = stride
    # Branch dispatch copied from the PyTorch module (it checks stride[0] only).
    if in_channels == out_channels and sh == 1 and not if_first:
        return x_nchw                                        # identity branch

    N, C, H, W = x_nchw.shape
    assert C == in_channels
    weight = params["weight"].astype(x_nchw.dtype)           # bf16 nets -> bf16 MXU operands
    scale, bias = fold_bn(params)

    if if_first:
        # ConvBNACT: 1x1 conv with stride == spatial subsample + channel matmul.
        x_red = x_nchw[:, :, ::sh, ::sw] if (sh > 1 or sw > 1) else x_nchw
    else:
        # ConvBNACTWithPool: AvgPool2d(kernel=stride, stride=stride, ceil_mode=True).
        # TODO(synk): the window-sum could also run inside the kernel (contiguous
        # lane-chunk adds) to save one more X/4 HBM pass; kept as one fused XLA
        # reduction here for robustness.
        x_red = _avg_pool_ceil(x_nchw, sh, sw)

    Ho, Wo = x_red.shape[2], x_red.shape[3]
    xm = x_red.reshape(N, C, Ho * Wo)                        # free view (merge minor dims)
    out_m = _conv1x1_bn(xm, weight, scale, bias)             # Pallas kernel
    return out_m.reshape(N, out_channels, Ho, Wo)            # free view, already NCHW


# ----------------------------------------------------------------------------
# Pure-JAX reference (same semantics) for verification
# ----------------------------------------------------------------------------
def _ref_avg_pool_ceil(x, sh, sw):
    N, C, H, W = x.shape
    Ho, Wo = -(-H // sh), -(-W // sw)
    rows = []
    for ho in range(Ho):
        cols = []
        for wo in range(Wo):
            win = x[:, :, ho * sh:min((ho + 1) * sh, H), wo * sw:min((wo + 1) * sw, W)]
            cols.append(win.mean(axis=(2, 3)))
        rows.append(jnp.stack(cols, axis=-1))
    return jnp.stack(rows, axis=-2)


def shortcut_reference(x_nchw, in_channels, out_channels, stride, if_first, params):
    sh, sw = stride
    if in_channels == out_channels and sh == 1 and not if_first:
        return x_nchw
    if if_first:
        x_red = x_nchw[:, :, ::sh, ::sw]
    else:
        x_red = _ref_avg_pool_ceil(x_nchw, sh, sw)
    y = jnp.einsum("nchw,oc->nohw", x_red, params["weight"])
    scale = params["gamma"] * jax.lax.rsqrt(params["running_var"] + BN_EPS)
    bias = params["beta"] - params["running_mean"] * scale
    return y * scale[None, :, None, None] + bias[None, :, None, None]


if __name__ == "__main__":
    key = jax.random.PRNGKey(0)
    k_x1, k_x2, k_x3, k_p1, k_p2, k_p3, k_p4 = jax.random.split(key, 7)

    N, Cin, H, W = 2, 4, 16, 16
    Cout = 8
    x1 = jax.random.normal(k_x1, (N, Cin, H, W), jnp.float32)

    # Case 1: ConvBNACTWithPool branch (in != out, stride 2, if_first=False)
    p1 = make_params(Cin, Cout, k_p1)
    out1 = shortcut_forward(x1, Cin, Cout, (2, 2), False, p1)
    ref1 = shortcut_reference(x1, Cin, Cout, (2, 2), False, p1)

    # Case 2: ConvBNACT branch (if_first=True, strided 1x1 conv)
    p2 = make_params(Cin, Cout, k_p2)
    out2 = shortcut_forward(x1, Cin, Cout, (2, 2), True, p2)
    ref2 = shortcut_reference(x1, Cin, Cout, (2, 2), True, p2)

    # Case 3: identity branch (in == out, stride 1, if_first=False)
    out3 = shortcut_forward(x1, Cin, Cin, (1, 1), False, None)

    # Case 4: ragged spatial tile (M = 144 -> one 128-lane block + masked tail)
    x2 = jax.random.normal(k_x2, (2, Cin, 24, 24), jnp.float32)
    p3 = make_params(Cin, Cout, k_p3)
    out4 = shortcut_forward(x2, Cin, Cout, (2, 2), True, p3)
    ref4 = shortcut_reference(x2, Cin, Cout, (2, 2), True, p3)

    # Case 5: ceil_mode avg-pool on non-divisible spatial dims (15 -> 8)
    x3 = jax.random.normal(k_x3, (2, Cin, 15, 15), jnp.float32)
    p4 = make_params(Cin, Cout, k_p4)
    out5 = shortcut_forward(x3, Cin, Cout, (2, 2), False, p4)
    ref5 = shortcut_reference(x3, Cin, Cout, (2, 2), False, p4)

    jax.block_until_ready((out1, out2, out3, out4, out5))

    assert out1.shape == (N, Cout, H // 2, W // 2)
    assert out2.shape == (N, Cout, H // 2, W // 2)
    assert out3.shape == x1.shape
    assert out4.shape == (2, Cout, 12, 12)
    assert out5.shape == (2, Cout, 8, 8)
    assert jnp.allclose(out1, ref1, atol=1e-5, rtol=1e-5)
    assert jnp.allclose(out2, ref2, atol=1e-5, rtol=1e-5)
    assert jnp.allclose(out3, x1)
    assert jnp.allclose(out4, ref4, atol=1e-5, rtol=1e-5)
    assert jnp.allclose(out5, ref5, atol=1e-5, rtol=1e-5)

    print("KERNEL_OK")
</pallas_src>

<mosaic_0001>
module attributes {stable_mosaic.version = 11 : i64} {
  func.func @_conv_bn_kernel(%arg0: i32, %arg1: i32, %arg2: memref<1x4x64xf32, #tpu.memory_space<vmem>>, %arg3: memref<8x4xf32, #tpu.memory_space<vmem>>, %arg4: memref<8x1xf32, #tpu.memory_space<vmem>>, %arg5: memref<8x1xf32, #tpu.memory_space<vmem>>, %arg6: memref<1x8x64xf32, #tpu.memory_space<vmem>>) attributes {dimension_semantics = [#tpu.dimension_semantics<parallel>, #tpu.dimension_semantics<parallel>], iteration_bounds = array<i64: 2, 1>, scalar_prefetch = 0 : i64, scratch_operands = 0 : i64, tpu.core_type = #tpu.core_type<tc>, window_params = [{transform_indices = @transform_0, window_bounds = array<i64: 1, 4, 64>}, {pipeline_mode = #tpu.pipeline_mode<synchronous>, transform_indices = @transform_1, window_bounds = array<i64: 8, 4>}, {pipeline_mode = #tpu.pipeline_mode<synchronous>, transform_indices = @transform_2, window_bounds = array<i64: 8, 1>}, {pipeline_mode = #tpu.pipeline_mode<synchronous>, transform_indices = @transform_3, window_bounds = array<i64: 8, 1>}, {transform_indices = @transform_4, window_bounds = array<i64: 1, 8, 64>}]} {
    %c0 = arith.constant 0 : index
    %c0_0 = arith.constant 0 : index
    %0 = vector.load %arg3[%c0, %c0_0] : memref<8x4xf32, #tpu.memory_space<vmem>>, vector<8x4xf32>
    %c0_1 = arith.constant 0 : index
    %c0_2 = arith.constant 0 : index
    %c0_3 = arith.constant 0 : index
    %1 = vector.load %arg2[%c0_1, %c0_2, %c0_3] : memref<1x4x64xf32, #tpu.memory_space<vmem>>, vector<1x4x64xf32>
    %2 = vector.shape_cast %1 : vector<1x4x64xf32> to vector<4x64xf32>
    %cst = arith.constant dense<0.000000e+00> : vector<8x64xf32>
    %3 = tpu.matmul %0, %2, %cst {dimension_numbers = #tpu.dot_dimension_numbers<[1], [0], [0], [1], [0, 0, 1, 1], [], []>} : vector<8x4xf32>, vector<4x64xf32>, vector<8x64xf32> -> vector<8x64xf32>
    %c0_4 = arith.constant 0 : index
    %c0_5 = arith.constant 0 : index
    %4 = vector.load %arg4[%c0_4, %c0_5] : memref<8x1xf32, #tpu.memory_space<vmem>>, vector<8x1xf32>
    %5 = vector.broadcast %4 : vector<8x1xf32> to vector<8x64xf32>
    %6 = arith.mulf %3, %5 : vector<8x64xf32>
    %c0_6 = arith.constant 0 : index
    %c0_7 = arith.constant 0 : index
    %7 = vector.load %arg5[%c0_6, %c0_7] : memref<8x1xf32, #tpu.memory_space<vmem>>, vector<8x1xf32>
    %8 = vector.broadcast %7 : vector<8x1xf32> to vector<8x64xf32>
    %9 = arith.addf %6, %8 : vector<8x64xf32>
    %c0_8 = arith.constant 0 : index
    %c0_9 = arith.constant 0 : index
    %c0_10 = arith.constant 0 : index
    %10 = vector.load %arg6[%c0_8, %c0_9, %c0_10] : memref<1x8x64xf32, #tpu.memory_space<vmem>>, vector<1x8x64xf32>
    %11 = vector.shape_cast %10 : vector<1x8x64xf32> to vector<8x64xf32>
    %12 = vector.shape_cast %9 : vector<8x64xf32> to vector<1x8x64xf32>
    tpu.vector_store %arg6[%c0_8, %c0_9, %c0_10], %12 {strides = array<i32>} : memref<1x8x64xf32, #tpu.memory_space<vmem>>, vector<1x8x64xf32>,
    return
  }
  func.func @transform_0(%arg0: i32, %arg1: i32) -> (i32, i32, i32) {
    %c0_i32 = arith.constant 0 : i32
    %c0_i32_0 = arith.constant 0 : i32
    return %arg0, %c0_i32, %arg1 : i32, i32, i32
  }
  func.func @transform_1(%arg0: i32, %arg1: i32) -> (i32, i32) {
    %c0_i32 = arith.constant 0 : i32
    %c0_i32_0 = arith.constant 0 : i32
    %c0_i32_1 = arith.constant 0 : i32
    return %c0_i32, %c0_i32_0 : i32, i32
  }
  func.func @transform_2(%arg0: i32, %arg1: i32) -> (i32, i32) {
    %c0_i32 = arith.constant 0 : i32
    %c0_i32_0 = arith.constant 0 : i32
    %c0_i32_1 = arith.constant 0 : i32
    return %c0_i32, %c0_i32_0 : i32, i32
  }
  func.func @transform_3(%arg0: i32, %arg1: i32) -> (i32, i32) {
    %c0_i32 = arith.constant 0 : i32
    %c0_i32_0 = arith.constant 0 : i32
    %c0_i32_1 = arith.constant 0 : i32
    return %c0_i32, %c0_i32_0 : i32, i32
  }
  func.func @transform_4(%arg0: i32, %arg1: i32) -> (i32, i32, i32) {
    %c0_i32 = arith.constant 0 : i32
    %c0_i32_0 = arith.constant 0 : i32
    return %arg0, %c0_i32, %arg1 : i32, i32, i32
  }
}

</mosaic_0001>

<bundles_post_ra>
// kernel: tpu_custom_call.1
= control target key start
LH: loop header
LB: loop body
LE: loop exit
PB: predicated region body
PF: predicated region fallthrough
CT: control target
= control target key end

     0   :  { %9 = vsyncpa [#allocation3], 0  ;;  %s709_s0 = inlined_call_operand.vmem [shape: f32[2,4,64], index: 0, kind: input, shape index: {}]   ;;  %s710_s1 = inlined_call_operand.vmem [shape: f32[8,4], index: 1, kind: input, shape index: {}]   ;;  %s711_s2 = inlined_call_operand.vmem [shape: f32[8,1], index: 2, kind: input, shape index: {}]   ;;  %s712_s3 = inlined_call_operand.vmem [shape: f32[8,1], index: 3, kind: input, shape index: {}]   ;;  %s713_s4 = inlined_call_operand.hbm [shape: f32[2,8,64], index: 4, kind: output, shape index: {}]  }
   0x1   :  { %11 = vsyncpa [#allocation3 + $0x1], 0  ;;  %s588_s15 = smov 0   ;;  %s590_s16 = smov 0  }
   0x2   :  { %s592_s17 = smov 0   ;;  %s594_s18 = smov 0  }
   0x3   :  { %s596_s19 = smov 0   ;;  %s598_s20 = smov 0  }
   0x4 LB: > { %s400_s21 = sadd.s32 4294967295, %s557_s20   ;;  %s401_s22 = sadd.s32 4294967294, %s557_s20   ;;  %s557_s20 = sphi %s598_s20, %s17_s20   ;;  %s553_s19 = sphi %s596_s19, %s720_s19   ;;  %s549_s18 = sphi %s594_s18, %s719_s18   ;;  %s545_s17 = sphi %s592_s17, %s718_s17   ;;  %s541_s16 = sphi %s590_s16, %s717_s16   ;;  %s537_s15 = sphi %s588_s15, %s716_s15  }
   0x5   : > { %s29_s23 = sadd.s32 1, %s553_s19  ;;  %s129_s24 = sadd.s32 1, %s545_s17 }
   0x6   : > { %p31_p0 = scmp.ge.s32.totalorder %s29_s23, 2  ;;  %p139_p1 = scmp.ne.s32.totalorder %s545_s17, %s541_s16 }
   0x7   : > { %p140_p2 = scmp.eq.s32.totalorder %s400_s21, 1  ;;  %p145_p3 = scmp.ne.s32.totalorder %s541_s16, %s537_s15 }
   0x8   : > { %s722_s23 = smov (%p31_p0, %s29_s23), 0  ;;  %p146_p5 = scmp.eq.s32.totalorder %s401_s22, 1 }
   0x9   : > { %p628_p4 = por %p140_p2, %p139_p1  ;;  %s124_s26 = ssub.s32 %s553_s19, %s722_s23 }
   0xa   : > { %p404_p6 = scmp.ge.s32.totalorder %s557_s20, 1  ;;  %p127_p7 = scmp.eq.s32.totalorder %s124_s26, 0 }
   0xb   : > { %p635_p8 = por %p146_p5, %p145_p3  ;;  %p183_p9 = scmp.lt.s32.totalorder %s557_s20, 3 }
   0xc   : > { %s641_s28 = scalar_select %p127_p7, %s545_s17, %s129_s24  }
   0xd   : > { %p184_p10 = pnand %p404_p6, %p183_p9 }
   0xe   : > { %p211_p11 = scmp.lt.s32.totalorder (!%p184_p10), %s549_s18, 1  ;;  %v559_v0 = vmov (!%p184_p10), 0.0   ;;  %vm560_vm0 = vmmov (!%p184_p10), 0   ;;  %v298_v1 = vld [vmem:[%s711_s2] sm:$0xff] (!%p184_p10)  ;;  %v561_v2 = vmov (!%p184_p10), 0   ;;  %vm224_vm1 = vcmask (!%p184_p10), 1043456  }
   0xf   : > { %187 = sbr.rel (%p184_p10) target bundleno = 258 (0x102), region = 36  ;;  %415 = vmatprep.subr.mxu0 (!%p184_p10), %v559_v0  ;;  %417 = vmatprep.mubr.msk.f32.mxu0 (!%p184_p10), %vm560_vm0, %v559_v0  ;;  %v305_v3 = vld [vmem:[%s712_s3] sm:$0xff] (!%p184_p10)  ;;  %vm220_vm2 = vcmask (!%p184_p10), 31744   ;;  %s208_s14 = sand.u32 (!%p184_p10), 1, %s541_s16   ;;  %vm312_vm3 = vcmask (!%p184_p10), 523264  }
  0x10   : > { %478 = vset.pattern.permute.xlu0 (!%p184_p10), %v561_v2  ;;  %v218_v4 = vld [vmem:[%s710_s1] sm:$0xff] (!%p184_p10)  ;;  %s405_s21 = sshll.u32 (!%p184_p10), %s208_s14, 3  ;;  %s410_s22 = sshll.u32 (!%p184_p10), %s549_s18, 7 }
  0x11   : > { %301 = vperm.xlu0 (!%p184_p10), %478, %v298_v1   ;;  %s210_s24 = scalar_lea.vmem (!%p184_p10), [#allocation2], %s405_s21  ;;  %s562_s7 = smov (!%p184_p10), [#allocation2]  }
  0x12   : > { %s329_s26 = sshll.u32 (!%p184_p10), %s210_s24, 4  ;;  %s483_s8 = sshll.u32 (!%p184_p10), %s562_s7, 4  ;;  %s664_s26 = int_to_ptr.vmem [resolvable:$true] %s329_s26  ;;  %s484_s8 = int_to_ptr.vmem [resolvable:$false] %s483_s8 }
  0x13   : > { %s485_s9 = scalar_lea.vmem (!%p184_p10), %s484_s8, 256  ;;  %p486_p1 = scmp.lt.s32.totalorder (!%p184_p10), %s664_s26, %s484_s8 }
  0x15   : > { %308 = vperm.xlu0 (!%p184_p10), %478, %v305_v3  }
  0x16   : > { %s212_s5 = scalar_select %p211_p11, %s549_s18, 1 }
  0x17   : > { %s479_s18 = scalar_lea.vmem %s664_s26, 128 }
  0x18   : > { %s406_s6 = sshll.u32 %s212_s5, 2  ;;  %s662_s5 = scalar_lea.hbm %s713_s4, %s410_s22 }
  0x19   : > { %s217_s11 = scalar_lea.vmem %s709_s0, %s406_s6  ;;  %s315_s6 = scalar_lea.sflag [#allocation3], %s208_s14 }
  0x1a   : > { %v219_v5 = vld [vmem:[%s217_s11] sm:$0xf]  ;;  %p480_p12 = scmp.ne.s32.totalorder %s664_s26, %s479_s18  ;;  %p487_p2 = scmp.lt.s32.totalorder %s485_s9, %s479_s18 }
  0x1b   : > { %416 = vmatpush3.msk.msra.mxu0 %vm224_vm1, %v219_v5 }
  0x1c   : > { %418 = vmatmul.mubr.msk.f32.vlgmr.msra.gmra.mrb[0].mxu0 %vm220_vm2, %v218_v4  ;;  %p481_p13 = pnand %p480_p12, %p628_p4  ;;  %p488_p3 = por %p487_p2, %p486_p1 }
  0x1e   : > { %p482_p0 = pneg %p481_p13 }
  0x20   : > { %p489_p5 = pnand %p488_p3, %p482_p0 }
  0x90   : > { %v302_v6 = vpop.permute.xlu0 %301 }
  0x94   : > { %v309_v10 = vpop.permute.xlu0 %308 }
  0xef   : > { %v294_v7 = vpop.f32.mrb[0].mxu0 }
  0xf0   : > { %v304_v8 = vmul.f32 %v302_v6, %v294_v7  ;;  %v419_v9 = vpop.f32.mrb[1].mxu0 }
  0xf2   : > { %v311_v11 = vadd.f32 %v309_v10, %v304_v8 }
  0xf4   : > { %313 = vst.msk [vmem:[%s210_s24] sm:$0xff] %vm312_vm3, %v311_v11 }
  0xf5   : > { %492 = shalt.err (!%p489_p5)
}
  0xf6   : > { %s493_s10 = scalar_lea.hbm %s662_s5, 128  ;;  %s497_s13 = scalar_lea.hbm %s713_s4, 256 }
  0xf7   : > { %p494_p6 = scmp.ne.s32.totalorder %s662_s5, %s493_s10  ;;  %p498_p10 = scmp.lt.u32.totalorder %s662_s5, %s713_s4 }
  0xf8   : > { %p499_p11 = scmp.lt.u32.totalorder %s497_s13, %s493_s10  ;;  %p501_p13 = scmp.lt.u32.totalorder %s493_s10, %s662_s5 }
  0xf9   : > { %p495_p7 = pnand %p494_p6, %p628_p4 }
  0xfa   : > { %p500_p12 = por %p499_p11, %p498_p10 }
  0xfb   : > { %p496_p9 = pneg %p495_p7 }
  0xfc   : > { %p502_p0 = por %p501_p13, %p500_p12 }
  0xfe   : > { %p503_p1 = pnand %p502_p0, %p496_p9 }
 0x100   : > { %506 = shalt.err (!%p503_p1)
}
 0x101   : > { %420 = dma.vmem_to_hbm [thread:$0]  (%p628_p4), %s664_s26, 128, %s662_s5, %s315_s6  }
 0x102 PF: > { %p426_p2 = scmp.ge.s32.totalorder %s557_s20, 2  ;;  %s341_s22 = sand.u32 1, %s537_s15  }
 0x103   : > { %s342_s24 = scalar_lea.sflag [#allocation3], %s341_s22 }
 0x104   : > { %p423_p3 = pnand %p426_p2, %p635_p8 }
 0x106   : > { %532 = dma.done.wait (!%p423_p3), %s342_s24, 128  }
 0x107   : > { %534 = vsyncadd (!%p423_p3), %s342_s24, 4294967168  ;;  %s17_s20 = sadd.s32 1, %s557_s20   ;;  %s716_s15 = smov %s541_s16 }
 0x108   : > { %p14_p5 = scmp.ge.s32.totalorder %s17_s20, 4   ;;  %s717_s16 = smov %s545_s17 }
 0x109   : > { %s718_s17 = smov %s641_s28  ;;  %s719_s18 = smov %s553_s19 }
 0x10a   : > { %s720_s19 = smov %s722_s23  ;;  %16 = sbr.rel (!%p14_p5) target bundleno = 4 (0x4), region = 71 }
 0x111   :  { %347 = vsyncpa [#allocation3], 1 }
 0x112   :  { %349 = vsyncpa [#allocation3 + $0x1], 1 }

</bundles_post_ra>
